<compile_context>
chip_gen: v6e
topology: v6e:2x2x1
jax: 0.10.0
libtpu: 0.0.40
codegen_flags: <defaults>
</compile_context>

<pallas_src>
import jax
import jax.numpy as jnp
from jax.experimental import pallas as pl
from jax.experimental.pallas import tpu as pltpu


def _residual_pw_kernel(x_ref, w_ref, b_ref, o_ref):
    # x_ref / o_ref: (bn, C, ts, 128) VMEM blocks — each channel is a dense
    # (ts, 128) slab (full vregs, unmasked stores).
    # w_ref: (C, C) f32 in SMEM, residual already folded in (W + I).
    # b_ref: (C,) f32 in SMEM.
    bn, c_dim = x_ref.shape[0], x_ref.shape[1]
    for n in range(bn):
        # Load each input channel slab once (native dtype); cast per use.
        rows = [x_ref[n, c] for c in range(c_dim)]
        for o in range(c_dim):
            acc = rows[0].astype(jnp.float32) * w_ref[o, 0] + b_ref[o]
            for c in range(1, c_dim):
                acc = acc + w_ref[o, c] * rows[c].astype(jnp.float32)  # VPU FMA
            o_ref[n, o] = acc.astype(o_ref.dtype)


def _choose_tiles(N, C, S, itemsize, target_bytes=2 << 20):
    """Pick (sublane_tile, batch_fold) so one grid step moves ~target bytes.

    Per-step HBM traffic (in + out) = 2 * bn * C * ts * 128 * itemsize.
    ~2 MiB/step hides the ~0.35 us per-step overhead on all generations while
    double-buffered in+out VMEM stays ~4 MiB (under every scoped default).
    """
    def step_bytes(bn, ts):
        return 2 * bn * C * ts * 128 * itemsize

    # Largest multiple-of-8 divisor of S under the target; otherwise take the
    # full axis (full-dim blocks are always legal even when not 8-aligned).
    ts = S
    if step_bytes(1, S) > target_bytes and S % 8 == 0:
        ts = 8
        d = 8
        while d <= S:
            if S % d == 0 and step_bytes(1, d) <= target_bytes:
                ts = d
            d += 8

    # If the whole spatial axis fits in one step, fold batch into the block to
    # amortize step overhead — but keep >= 2 grid steps (v7x has 2 TCs).
    bn = 1
    if ts == S:
        while (N % (bn * 2) == 0 and N // (bn * 2) >= 2
               and step_bytes(bn * 2, S) <= target_bytes):
            bn *= 2
    return ts, bn


def residual_forward(x_nchw, weight, bias):
    """x_nchw: (N, C, H, W).  weight: (C_out=C, C_in=C).  bias: (C,)."""
    N, C, H, W = x_nchw.shape
    HW = H * W
    itemsize = jnp.dtype(x_nchw.dtype).itemsize

    # Lane-dense layout: split spatial into (S, 128) slabs; zero-pad HW up to a
    # multiple of 128 if needed (sliced off below), keeping stores unmasked.
    HWp = ((HW + 127) // 128) * 128
    x3 = x_nchw.reshape(N, C, HW)
    if HWp != HW:
        x3 = jnp.pad(x3, ((0, 0), (0, 0), (0, HWp - HW)))
    S = HWp // 128
    x4 = x3.reshape(N, C, S, 128)

    # Fold the residual into the pointwise weights: y = (W + I) x + b == fn(x) + x.
    w_eff = weight.astype(jnp.float32) + jnp.eye(C, dtype=jnp.float32)
    b_eff = bias.astype(jnp.float32)

    ts, bn = _choose_tiles(N, C, S, itemsize)
    grid = (N // bn, S // ts)

    out4 = pl.pallas_call(
        _residual_pw_kernel,
        out_shape=jax.ShapeDtypeStruct((N, C, S, 128), x4.dtype),
        grid_spec=pltpu.PrefetchScalarGridSpec(
            num_scalar_prefetch=0,
            grid=grid,
            in_specs=[
                pl.BlockSpec((bn, C, ts, 128), lambda n, s: (n, 0, s, 0)),
                pl.BlockSpec(memory_space=pltpu.MemorySpace.SMEM),  # folded weight
                pl.BlockSpec(memory_space=pltpu.MemorySpace.SMEM),  # bias
            ],
            out_specs=pl.BlockSpec((bn, C, ts, 128), lambda n, s: (n, 0, s, 0)),
        ),
        compiler_params=pltpu.CompilerParams(
            dimension_semantics=("parallel", "parallel")),
    )(x4, w_eff, b_eff)

    out3 = out4.reshape(N, C, HWp)
    if HWp != HW:
        out3 = out3[:, :, :HW]
    return out3.reshape(N, C, H, W)


if __name__ == "__main__":
    key = jax.random.PRNGKey(0)
    kx, kw, kb = jax.random.split(key, 3)

    N, C, H, W = 2, 4, 16, 16
    x = jax.random.normal(kx, (N, C, H, W), dtype=jnp.float32)
    # Deterministic synthetic parameters for the wrapped fn (1x1 conv).
    weight = jax.random.normal(kw, (C, C), dtype=jnp.float32) * 0.1
    bias = jax.random.normal(kb, (C,), dtype=jnp.float32) * 0.1

    out = jax.block_until_ready(residual_forward(x, weight, bias))

    # Pure-JAX reference: fn(x) + x with fn = 1x1 conv.
    ref = jnp.einsum("oc,nchw->nohw", weight, x) + bias[None, :, None, None] + x
    assert out.shape == (N, C, H, W)
    assert jnp.allclose(out, ref, atol=1e-5, rtol=1e-5)

    print("KERNEL_OK")
</pallas_src>

<mosaic_0001>
module attributes {stable_mosaic.version = 11 : i64} {
  func.func @_residual_pw_kernel(%arg0: i32, %arg1: i32, %arg2: memref<1x4x2x128xf32, #tpu.memory_space<vmem>>, %arg3: memref<4x4xf32, #tpu.memory_space<smem>>, %arg4: memref<4xf32, #tpu.memory_space<smem>>, %arg5: memref<1x4x2x128xf32, #tpu.memory_space<vmem>>) attributes {dimension_semantics = [#tpu.dimension_semantics<parallel>, #tpu.dimension_semantics<parallel>], iteration_bounds = array<i64: 2, 1>, scalar_prefetch = 0 : i64, scratch_operands = 0 : i64, tpu.core_type = #tpu.core_type<tc>, window_params = [{transform_indices = @transform_0, window_bounds = array<i64: 1, 4, 2, 128>}, {transform_indices = @transform_1, window_bounds = array<i64: 4, 4>}, {transform_indices = @transform_2, window_bounds = array<i64: 4>}, {transform_indices = @transform_3, window_bounds = array<i64: 1, 4, 2, 128>}]} {
    %c0 = arith.constant 0 : index
    %c0_0 = arith.constant 0 : index
    %c0_1 = arith.constant 0 : index
    %c0_2 = arith.constant 0 : index
    %0 = vector.load %arg2[%c0, %c0_0, %c0_1, %c0_2] : memref<1x4x2x128xf32, #tpu.memory_space<vmem>>, vector<1x1x2x128xf32>
    %1 = vector.shape_cast %0 : vector<1x1x2x128xf32> to vector<2x128xf32>
    %c0_3 = arith.constant 0 : index
    %c1 = arith.constant 1 : index
    %c0_4 = arith.constant 0 : index
    %c0_5 = arith.constant 0 : index
    %2 = vector.load %arg2[%c0_3, %c1, %c0_4, %c0_5] : memref<1x4x2x128xf32, #tpu.memory_space<vmem>>, vector<1x1x2x128xf32>
    %3 = vector.shape_cast %2 : vector<1x1x2x128xf32> to vector<2x128xf32>
    %c0_6 = arith.constant 0 : index
    %c2 = arith.constant 2 : index
    %c0_7 = arith.constant 0 : index
    %c0_8 = arith.constant 0 : index
    %4 = vector.load %arg2[%c0_6, %c2, %c0_7, %c0_8] : memref<1x4x2x128xf32, #tpu.memory_space<vmem>>, vector<1x1x2x128xf32>
    %5 = vector.shape_cast %4 : vector<1x1x2x128xf32> to vector<2x128xf32>
    %c0_9 = arith.constant 0 : index
    %c3 = arith.constant 3 : index
    %c0_10 = arith.constant 0 : index
    %c0_11 = arith.constant 0 : index
    %6 = vector.load %arg2[%c0_9, %c3, %c0_10, %c0_11] : memref<1x4x2x128xf32, #tpu.memory_space<vmem>>, vector<1x1x2x128xf32>
    %7 = vector.shape_cast %6 : vector<1x1x2x128xf32> to vector<2x128xf32>
    %c0_12 = arith.constant 0 : index
    %c0_13 = arith.constant 0 : index
    %8 = memref.load %arg3[%c0_12, %c0_13] : memref<4x4xf32, #tpu.memory_space<smem>>
    %9 = vector.broadcast %8 : f32 to vector<2x128xf32>
    %10 = arith.mulf %1, %9 : vector<2x128xf32>
    %c0_14 = arith.constant 0 : index
    %11 = memref.load %arg4[%c0_14] : memref<4xf32, #tpu.memory_space<smem>>
    %12 = vector.broadcast %11 : f32 to vector<2x128xf32>
    %13 = arith.addf %10, %12 : vector<2x128xf32>
    %c0_15 = arith.constant 0 : index
    %c1_16 = arith.constant 1 : index
    %14 = memref.load %arg3[%c0_15, %c1_16] : memref<4x4xf32, #tpu.memory_space<smem>>
    %15 = vector.broadcast %14 : f32 to vector<2x128xf32>
    %16 = arith.mulf %15, %3 : vector<2x128xf32>
    %17 = arith.addf %13, %16 : vector<2x128xf32>
    %c0_17 = arith.constant 0 : index
    %c2_18 = arith.constant 2 : index
    %18 = memref.load %arg3[%c0_17, %c2_18] : memref<4x4xf32, #tpu.memory_space<smem>>
    %19 = vector.broadcast %18 : f32 to vector<2x128xf32>
    %20 = arith.mulf %19, %5 : vector<2x128xf32>
    %21 = arith.addf %17, %20 : vector<2x128xf32>
    %c0_19 = arith.constant 0 : index
    %c3_20 = arith.constant 3 : index
    %22 = memref.load %arg3[%c0_19, %c3_20] : memref<4x4xf32, #tpu.memory_space<smem>>
    %23 = vector.broadcast %22 : f32 to vector<2x128xf32>
    %24 = arith.mulf %23, %7 : vector<2x128xf32>
    %25 = arith.addf %21, %24 : vector<2x128xf32>
    %c0_21 = arith.constant 0 : index
    %c0_22 = arith.constant 0 : index
    %c0_23 = arith.constant 0 : index
    %c0_24 = arith.constant 0 : index
    %26 = vector.load %arg5[%c0_21, %c0_22, %c0_23, %c0_24] : memref<1x4x2x128xf32, #tpu.memory_space<vmem>>, vector<1x1x2x128xf32>
    %27 = vector.shape_cast %26 : vector<1x1x2x128xf32> to vector<2x128xf32>
    %28 = vector.shape_cast %25 : vector<2x128xf32> to vector<1x1x2x128xf32>
    tpu.vector_store %arg5[%c0_21, %c0_22, %c0_23, %c0_24], %28 {strides = array<i32>} : memref<1x4x2x128xf32, #tpu.memory_space<vmem>>, vector<1x1x2x128xf32>,
    %c1_25 = arith.constant 1 : index
    %c0_26 = arith.constant 0 : index
    %29 = memref.load %arg3[%c1_25, %c0_26] : memref<4x4xf32, #tpu.memory_space<smem>>
    %30 = vector.broadcast %29 : f32 to vector<2x128xf32>
    %31 = arith.mulf %1, %30 : vector<2x128xf32>
    %c1_27 = arith.constant 1 : index
    %32 = memref.load %arg4[%c1_27] : memref<4xf32, #tpu.memory_space<smem>>
    %33 = vector.broadcast %32 : f32 to vector<2x128xf32>
    %34 = arith.addf %31, %33 : vector<2x128xf32>
    %c1_28 = arith.constant 1 : index
    %c1_29 = arith.constant 1 : index
    %35 = memref.load %arg3[%c1_28, %c1_29] : memref<4x4xf32, #tpu.memory_space<smem>>
    %36 = vector.broadcast %35 : f32 to vector<2x128xf32>
    %37 = arith.mulf %36, %3 : vector<2x128xf32>
    %38 = arith.addf %34, %37 : vector<2x128xf32>
    %c1_30 = arith.constant 1 : index
    %c2_31 = arith.constant 2 : index
    %39 = memref.load %arg3[%c1_30, %c2_31] : memref<4x4xf32, #tpu.memory_space<smem>>
    %40 = vector.broadcast %39 : f32 to vector<2x128xf32>
    %41 = arith.mulf %40, %5 : vector<2x128xf32>
    %42 = arith.addf %38, %41 : vector<2x128xf32>
    %c1_32 = arith.constant 1 : index
    %c3_33 = arith.constant 3 : index
    %43 = memref.load %arg3[%c1_32, %c3_33] : memref<4x4xf32, #tpu.memory_space<smem>>
    %44 = vector.broadcast %43 : f32 to vector<2x128xf32>
    %45 = arith.mulf %44, %7 : vector<2x128xf32>
    %46 = arith.addf %42, %45 : vector<2x128xf32>
    %c0_34 = arith.constant 0 : index
    %c1_35 = arith.constant 1 : index
    %c0_36 = arith.constant 0 : index
    %c0_37 = arith.constant 0 : index
    %47 = vector.load %arg5[%c0_34, %c1_35, %c0_36, %c0_37] : memref<1x4x2x128xf32, #tpu.memory_space<vmem>>, vector<1x1x2x128xf32>
    %48 = vector.shape_cast %47 : vector<1x1x2x128xf32> to vector<2x128xf32>
    %49 = vector.shape_cast %46 : vector<2x128xf32> to vector<1x1x2x128xf32>
    tpu.vector_store %arg5[%c0_34, %c1_35, %c0_36, %c0_37], %49 {strides = array<i32>} : memref<1x4x2x128xf32, #tpu.memory_space<vmem>>, vector<1x1x2x128xf32>,
    %c2_38 = arith.constant 2 : index
    %c0_39 = arith.constant 0 : index
    %50 = memref.load %arg3[%c2_38, %c0_39] : memref<4x4xf32, #tpu.memory_space<smem>>
    %51 = vector.broadcast %50 : f32 to vector<2x128xf32>
    %52 = arith.mulf %1, %51 : vector<2x128xf32>
    %c2_40 = arith.constant 2 : index
    %53 = memref.load %arg4[%c2_40] : memref<4xf32, #tpu.memory_space<smem>>
    %54 = vector.broadcast %53 : f32 to vector<2x128xf32>
    %55 = arith.addf %52, %54 : vector<2x128xf32>
    %c2_41 = arith.constant 2 : index
    %c1_42 = arith.constant 1 : index
    %56 = memref.load %arg3[%c2_41, %c1_42] : memref<4x4xf32, #tpu.memory_space<smem>>
    %57 = vector.broadcast %56 : f32 to vector<2x128xf32>
    %58 = arith.mulf %57, %3 : vector<2x128xf32>
    %59 = arith.addf %55, %58 : vector<2x128xf32>
    %c2_43 = arith.constant 2 : index
    %c2_44 = arith.constant 2 : index
    %60 = memref.load %arg3[%c2_43, %c2_44] : memref<4x4xf32, #tpu.memory_space<smem>>
    %61 = vector.broadcast %60 : f32 to vector<2x128xf32>
    %62 = arith.mulf %61, %5 : vector<2x128xf32>
    %63 = arith.addf %59, %62 : vector<2x128xf32>
    %c2_45 = arith.constant 2 : index
    %c3_46 = arith.constant 3 : index
    %64 = memref.load %arg3[%c2_45, %c3_46] : memref<4x4xf32, #tpu.memory_space<smem>>
    %65 = vector.broadcast %64 : f32 to vector<2x128xf32>
    %66 = arith.mulf %65, %7 : vector<2x128xf32>
    %67 = arith.addf %63, %66 : vector<2x128xf32>
    %c0_47 = arith.constant 0 : index
    %c2_48 = arith.constant 2 : index
    %c0_49 = arith.constant 0 : index
    %c0_50 = arith.constant 0 : index
    %68 = vector.load %arg5[%c0_47, %c2_48, %c0_49, %c0_50] : memref<1x4x2x128xf32, #tpu.memory_space<vmem>>, vector<1x1x2x128xf32>
    %69 = vector.shape_cast %68 : vector<1x1x2x128xf32> to vector<2x128xf32>
    %70 = vector.shape_cast %67 : vector<2x128xf32> to vector<1x1x2x128xf32>
    tpu.vector_store %arg5[%c0_47, %c2_48, %c0_49, %c0_50], %70 {strides = array<i32>} : memref<1x4x2x128xf32, #tpu.memory_space<vmem>>, vector<1x1x2x128xf32>,
    %c3_51 = arith.constant 3 : index
    %c0_52 = arith.constant 0 : index
    %71 = memref.load %arg3[%c3_51, %c0_52] : memref<4x4xf32, #tpu.memory_space<smem>>
    %72 = vector.broadcast %71 : f32 to vector<2x128xf32>
    %73 = arith.mulf %1, %72 : vector<2x128xf32>
    %c3_53 = arith.constant 3 : index
    %74 = memref.load %arg4[%c3_53] : memref<4xf32, #tpu.memory_space<smem>>
    %75 = vector.broadcast %74 : f32 to vector<2x128xf32>
    %76 = arith.addf %73, %75 : vector<2x128xf32>
    %c3_54 = arith.constant 3 : index
    %c1_55 = arith.constant 1 : index
    %77 = memref.load %arg3[%c3_54, %c1_55] : memref<4x4xf32, #tpu.memory_space<smem>>
    %78 = vector.broadcast %77 : f32 to vector<2x128xf32>
    %79 = arith.mulf %78, %3 : vector<2x128xf32>
    %80 = arith.addf %76, %79 : vector<2x128xf32>
    %c3_56 = arith.constant 3 : index
    %c2_57 = arith.constant 2 : index
    %81 = memref.load %arg3[%c3_56, %c2_57] : memref<4x4xf32, #tpu.memory_space<smem>>
    %82 = vector.broadcast %81 : f32 to vector<2x128xf32>
    %83 = arith.mulf %82, %5 : vector<2x128xf32>
    %84 = arith.addf %80, %83 : vector<2x128xf32>
    %c3_58 = arith.constant 3 : index
    %c3_59 = arith.constant 3 : index
    %85 = memref.load %arg3[%c3_58, %c3_59] : memref<4x4xf32, #tpu.memory_space<smem>>
    %86 = vector.broadcast %85 : f32 to vector<2x128xf32>
    %87 = arith.mulf %86, %7 : vector<2x128xf32>
    %88 = arith.addf %84, %87 : vector<2x128xf32>
    %c0_60 = arith.constant 0 : index
    %c3_61 = arith.constant 3 : index
    %c0_62 = arith.constant 0 : index
    %c0_63 = arith.constant 0 : index
    %89 = vector.load %arg5[%c0_60, %c3_61, %c0_62, %c0_63] : memref<1x4x2x128xf32, #tpu.memory_space<vmem>>, vector<1x1x2x128xf32>
    %90 = vector.shape_cast %89 : vector<1x1x2x128xf32> to vector<2x128xf32>
    %91 = vector.shape_cast %88 : vector<2x128xf32> to vector<1x1x2x128xf32>
    tpu.vector_store %arg5[%c0_60, %c3_61, %c0_62, %c0_63], %91 {strides = array<i32>} : memref<1x4x2x128xf32, #tpu.memory_space<vmem>>, vector<1x1x2x128xf32>,
    return
  }
  func.func @transform_0(%arg0: i32, %arg1: i32) -> (i32, i32, i32, i32) {
    %c0_i32 = arith.constant 0 : i32
    %c0_i32_0 = arith.constant 0 : i32
    %c0_i32_1 = arith.constant 0 : i32
    return %arg0, %c0_i32, %arg1, %c0_i32_0 : i32, i32, i32, i32
  }
  func.func @transform_1(%arg0: i32, %arg1: i32) -> (i32, i32) {
    %c0_i32 = arith.constant 0 : i32
    %c0_i32_0 = arith.constant 0 : i32
    %c0_i32_1 = arith.constant 0 : i32
    return %c0_i32, %c0_i32_0 : i32, i32
  }
  func.func @transform_2(%arg0: i32, %arg1: i32) -> i32 {
    %c0_i32 = arith.constant 0 : i32
    %c0_i32_0 = arith.constant 0 : i32
    return %c0_i32 : i32
  }
  func.func @transform_3(%arg0: i32, %arg1: i32) -> (i32, i32, i32, i32) {
    %c0_i32 = arith.constant 0 : i32
    %c0_i32_0 = arith.constant 0 : i32
    %c0_i32_1 = arith.constant 0 : i32
    return %arg0, %c0_i32, %arg1, %c0_i32_0 : i32, i32, i32, i32
  }
}

</mosaic_0001>

<bundles_post_ra>
// kernel: tpu_custom_call.1
= control target key start
LH: loop header
LB: loop body
LE: loop exit
PB: predicated region body
PF: predicated region fallthrough
CT: control target
= control target key end

     0   :  { %s954_s0 = inlined_call_operand.hbm [shape: f32[2,4,2,128], index: 0, kind: input, shape index: {}]   ;;  %s955_s1 = inlined_call_operand.hbm [shape: f32[4,4], index: 1, kind: input, shape index: {}]   ;;  %s956_s2 = inlined_call_operand.vmem [shape: f32[4], index: 2, kind: input, shape index: {}]   ;;  %s957_s3 = inlined_call_operand.hbm [shape: f32[2,4,2,128], index: 3, kind: output, shape index: {}]  }
   0x1   :  { %959 = sst [smem:[#allocation14_spill]] %s955_s1 }
   0x2   :  { %8 = vsyncpa [#allocation3], 0 }
   0x3   :  { %10 = vsyncpa [#allocation3 + $0x1], 0 }
   0x4   :  { %11 = vsyncpa [#allocation5], 0 }
   0x5   :  { %12 = vsyncpa [#allocation6], 0 }
   0x6   :  { %13 = vsyncpa [#allocation4], 0 }
   0x7   :  { %15 = vsyncpa [#allocation4 + $0x1], 0  ;;  %s745_s12 = smov 0   ;;  %s747_s13 = smov 0  }
   0x8   :  { %s749_s14 = smov 0   ;;  %s751_s15 = smov 0  }
   0x9   :  { %s753_s16 = smov 0   ;;  %s755_s17 = smov 0  }
   0xa LB: > { %s441_s18 = sadd.s32 4294967295, %s715_s17   ;;  %s442_s19 = sadd.s32 4294967294, %s715_s17   ;;  %s715_s17 = sphi %s755_s17, %s21_s17   ;;  %s711_s16 = sphi %s753_s16, %s975_s16   ;;  %s707_s15 = sphi %s751_s15, %s974_s15   ;;  %s703_s14 = sphi %s749_s14, %s973_s14   ;;  %s699_s13 = sphi %s747_s13, %s972_s13   ;;  %s695_s12 = sphi %s745_s12, %s971_s12  }
   0xb   : > { %s42_s20 = sadd.s32 1, %s703_s14  ;;  %p49_p0 = scmp.ne.s32.totalorder %s703_s14, %s699_s13 }
   0xc   : > { %p50_p1 = scmp.eq.s32.totalorder %s715_s17, 0  ;;  %p55_p2 = scmp.ne.s32.totalorder %s699_s13, %s695_s12 }
   0xd   : > { %p783_p3 = scmp.eq.s32.totalorder %s441_s18, 0  ;;  %p123_p4 = scmp.eq.s32.totalorder %s441_s18, 1 }
   0xe   : > { %p51_p5 = por %p50_p1, %p49_p0  ;;  %p129_p6 = scmp.eq.s32.totalorder %s442_s19, 1 }
   0xf   : > { %p789_p7 = por %p783_p3, %p55_p2  ;;  %p793_p8 = por %p123_p4, %p49_p0 }
  0x10   : > { %p797_p9 = por %p129_p6, %p55_p2  ;;  %p443_p10 = scmp.ge.s32.totalorder %s715_s17, 1 }
  0x11   : > { %s962_s23 = scalar_select %p793_p8, 1, 0 }
  0x12   : > { %s963_s24 = scalar_select %p797_p9, 1, 0 }
  0x13   : > { %p136_p11 = scmp.lt.s32.totalorder %s715_s17, 3  ;;  %p515_p1 = scmp.lt.s32.totalorder %s715_s17, 2 }
  0x14   : > { %s158_s28 = sshll.u32 %s956_s2, 4  ;;  %s169_s4 = sand.u32 1, %s703_s14   ;;  %s159_s28 = int_to_ptr.vmem [resolvable:$true] %s158_s28 }
  0x15   : > { %p804_p13 = pnand %p443_p10, %p136_p11  ;;  %p814_p4 = pnand %p515_p1, %p51_p5 }
  0x16   : > { %s33_s5 = sadd.s32 1, %s711_s16  ;;  %s717_s6 = smov [#allocation7]  }
  0x17   : > { %p498_p0 = pneg %p804_p13  ;;  %s967_s1 = sld [smem:[#allocation14_spill]] }
  0x18   : > { %s584_s9 = scalar_lea.vmem %s159_s28, 16  ;;  %p592_p1 = scmp.lt.s32.totalorder %s159_s28, %s159_s28 }
  0x19   : > { %p820_p2 = pnand %p498_p0, %p783_p3  ;;  %p585_p5 = scmp.ne.s32.totalorder %s159_s28, %s584_s9 }
  0x1a   : > { %p593_p0 = scmp.lt.s32.totalorder %s584_s9, %s584_s9 }
  0x1b   : > { %p586_p6 = pneg %p820_p2 }
  0x1c   : > { %p594_p12 = por %p593_p0, %p592_p1 }
  0x1d   : > { %501 = dma.hbm_to_smem (!%p820_p2), %s967_s1, 64, %s717_s6, [#allocation5]  }
  0x1e   : > { %p587_p10 = pnand %p586_p6, %p585_p5 }
  0x20   : > { %p588_p11 = pneg %p587_p10 }
  0x22   : > { %p595_p9 = pnand %p594_p12, %p588_p11 }
  0x24   : > { %598 = shalt.err (!%p595_p9)
}
  0x25   : > { %s718_s10 = smov [#allocation8]   ;;  %p35_p8 = scmp.ge.s32.totalorder %s33_s5, 2 }
  0x26   : > { %504 = dma.vmem_to_smem (!%p820_p2), %s159_s28, 16, %s718_s10, [#allocation6]  }
  0x27   : > { %s447_s11 = sshll.u32 %s169_s4, 3  ;;  %s484_s18 = sshll.u32 %s711_s16, 7 }
  0x28   : > { %s977_s5 = smov (%p35_p8, %s33_s5), 0  ;;  %s180_s27 = scalar_lea.hbm %s954_s0, %s484_s18 }
  0x29   : > { %s37_s6 = ssub.s32 %s711_s16, %s977_s5  ;;  %s173_s7 = scalar_lea.vmem [#allocation2], %s447_s11 }
  0x2a   : > { %s181_s8 = sshll.u32 %s173_s7, 4  ;;  %p40_p9 = scmp.eq.s32.totalorder %s37_s6, 0  ;;  %s182_s8 = int_to_ptr.vmem [resolvable:$true] %s181_s8 }
  0x2b   : > { %s170_s9 = scalar_lea.sflag [#allocation3], %s169_s4  ;;  %p601_p12 = pneg %p814_p4 }
  0x2c   : > { %s846_s30 = scalar_select %p40_p9, %s703_s14, %s42_s20  }
  0x2d   : > { %s612_s28 = scalar_lea.vmem %s182_s8, 128  ;;  %s719_s10 = smov [#allocation2]  }
  0x2e   : > { %p613_p2 = scmp.ne.s32.totalorder %s182_s8, %s612_s28  ;;  %s617_s1 = sshll.u32 %s719_s10, 4  ;;  %s618_s1 = int_to_ptr.vmem [resolvable:$false] %s617_s1 }
  0x2f   : > { %s619_s19 = scalar_lea.vmem %s618_s1, 256  ;;  %p620_p6 = scmp.lt.s32.totalorder %s182_s8, %s618_s1 }
  0x30   : > { %p615_p8 = pnand %p613_p2, %p601_p12  ;;  %p621_p10 = scmp.lt.s32.totalorder %s619_s19, %s612_s28 }
  0x32   : > { %p616_p5 = pneg %p615_p8  ;;  %p622_p11 = por %p621_p10, %p620_p6 }
  0x34   : > { %p623_p1 = pnand %p622_p11, %p616_p5 }
  0x36   : > { %626 = shalt.err (!%p623_p1)
}
  0x37   : > { %s720_s11 = smov 32   ;;  %s721_s20 = smov 2  }
  0x38   : > { %508 = dma.hbm_to_vmem [thread:$0]  (!%p814_p4), %s180_s27, 128, %s182_s8, %s170_s9, %s720_s11, %s720_s11, %s721_s20  }
  0x39   : > { %193 = sbr.rel (%p804_p13) target bundleno = 115 (0x73), region = 32  ;;  %s855_s4 = sand.u32 (!%p804_p13), 1, %s699_s13  }
  0x3a   : > { %s451_s1 = sshll.u32 (!%p804_p13), %s855_s4, 3  ;;  %s196_s18 = scalar_lea.sflag (!%p804_p13), [#allocation3], %s855_s4 }
  0x3b   : > { %s199_s26 = scalar_lea.vmem (!%p804_p13), [#allocation2], %s451_s1 }
  0x3e   : > { %678 = dma.done.wait (%p789_p7), %s196_s18, 128  }
  0x3f   : > { %680 = vsyncadd (%p789_p7), %s196_s18, 4294967168 }
  0x40   : > { %682 = dma.done.wait (%p783_p3), [#allocation5], 64  }
  0x41   : > { %684 = vsyncadd (%p783_p3), [#allocation5], 4294967232 }
  0x42   : > { %686 = dma.done.wait (%p783_p3), [#allocation6], 16  }
  0x43   : > { %688 = vsyncadd (%p783_p3), [#allocation6], 4294967280 }
  0x44   : > { %212 = sfence }
  0x45   : > { %s238_s25 = sld [smem:[#allocation7]]  ;;  %v231_v0 = vld [vmem:[%s199_s26] sm:$0x3]  ;;  %v873_v1 = vld [vmem:[%s199_s26 + $0x2] sm:$0x3]  ;;  %p968_p7 = scmp.ne.s32.totalorder %s962_s23, 0 }
  0x46   : > { %s241_s29 = sld [smem:[#allocation8]]  ;;  %v875_v3 = vld [vmem:[%s199_s26 + $0x4] sm:$0x3]  ;;  %v877_v6 = vld [vmem:[%s199_s26 + $0x6] sm:$0x3] }
  0x47   : > { %s458_s27 = sld [smem:[#allocation7 + $0x1]] }
  0x48   : > { %s459_s6 = sld [smem:[#allocation7 + $0x2]] }
  0x49   : > { %s460_s22 = sld [smem:[#allocation7 + $0x3]] }
  0x4a   : > { %s461_s7 = sld [smem:[#allocation7 + $0x80]] }
  0x4b   : > { %v239_v2 = vstv %s238_s25  ;;  %s462_s8 = sld [smem:[#allocation8 + $0x1]] }
  0x4c   : > { %v240_v4 = vmul.f32 %v239_v2, %v231_v0  ;;  %v242_v5 = vstv %s241_s29  ;;  %s463_s9 = sld [smem:[#allocation7 + $0x81]]  ;;  %s887_s29 = scalar_lea.vmem [#allocation9], %s451_s1 }
  0x4d   : > { %v245_v7 = vstv %s458_s27  ;;  %s464_s21 = sld [smem:[#allocation7 + $0x82]]  ;;  %s332_s1 = sshll.u32 %s887_s29, 4  ;;  %s900_s1 = int_to_ptr.vmem [resolvable:$true] %s332_s1 }
  0x4e   : > { %v243_v8 = vadd.f32 %v242_v5, %v240_v4  ;;  %v246_v9 = vmul.f32 %v873_v1, %v245_v7  ;;  %v249_v10 = vstv %s459_s6  ;;  %s465_s28 = sld [smem:[#allocation7 + $0x83]] }
  0x4f   : > { %v250_v11 = vmul.f32 %v875_v3, %v249_v10  ;;  %v253_v12 = vstv %s460_s22  ;;  %s467_s10 = sld [smem:[#allocation7 + $0x100]] }
  0x50   : > { %v247_v13 = vadd.f32 %v246_v9, %v243_v8  ;;  %v254_v14 = vmul.f32 %v877_v6, %v253_v12  ;;  %v258_v15 = vstv %s461_s7  ;;  %s468_s19 = sld [smem:[#allocation8 + $0x2]]  ;;  %s485_s7 = sshll.u32 %s707_s15, 7 }
  0x51   : > { %v259_v16 = vmul.f32 %v258_v15, %v231_v0  ;;  %v261_v17 = vstv %s462_s8  ;;  %s469_s11 = sld [smem:[#allocation7 + $0x101]]  ;;  %s722_s15 = smov [#allocation9]  }
  0x52   : > { %v251_v18 = vadd.f32 %v250_v11, %v247_v13  ;;  %v264_v19 = vstv %s463_s9  ;;  %s470_s20 = sld [smem:[#allocation7 + $0x102]] }
  0x53   : > { %v262_v20 = vadd.f32 %v261_v17, %v259_v16  ;;  %v265_v21 = vmul.f32 %v873_v1, %v264_v19  ;;  %v268_v22 = vstv %s464_s21  ;;  %s471_s18 = sld [smem:[#allocation7 + $0x103]]  ;;  %s905_s21 = scalar_lea.hbm %s957_s3, %s485_s7 }
  0x54   : > { %v255_v23 = vadd.f32 %v254_v14, %v251_v18  ;;  %v269_v24 = vmul.f32 %v875_v3, %v268_v22  ;;  %v272_v25 = vstv %s465_s28  ;;  %s473_s26 = sld [smem:[#allocation7 + $0x180]]  ;;  %s318_s28 = scalar_lea.sflag [#allocation4], %s855_s4 }
  0x55   : > { %v266_v26 = vadd.f32 %v265_v21, %v262_v20  ;;  %v273_v27 = vmul.f32 %v877_v6, %v272_v25  ;;  %v278_v28 = vstv %s467_s10  ;;  %s474_s25 = sld [smem:[#allocation8 + $0x3]]  ;;  %s627_s10 = scalar_lea.vmem %s900_s1, 128 }
  0x56   : > { %256 = vst [vmem:[%s887_s29] sm:$0x3] %v255_v23  ;;  %v279_v29 = vmul.f32 %v278_v28, %v231_v0  ;;  %v281_v30 = vstv %s468_s19  ;;  %s475_s27 = sld [smem:[#allocation7 + $0x181]]  ;;  %p628_p3 = scmp.ne.s32.totalorder %s900_s1, %s627_s10 }
  0x57   : > { %v270_v31 = vadd.f32 %v269_v24, %v266_v26  ;;  %v284_v32 = vstv %s469_s11  ;;  %s476_s6 = sld [smem:[#allocation7 + $0x182]]  ;;  %s631_s19 = sshll.u32 %s722_s15, 4  ;;  %s632_s19 = int_to_ptr.vmem [resolvable:$false] %s631_s19 }
  0x58   : > { %v282_v33 = vadd.f32 %v281_v30, %v279_v29  ;;  %v285_v34 = vmul.f32 %v873_v1, %v284_v32  ;;  %v288_v35 = vstv %s470_s20  ;;  %s477_s22 = sld [smem:[#allocation7 + $0x183]]  ;;  %p629_p13 = pnand %p628_p3, %p968_p7 }
  0x59   : > { %v274_v36 = vadd.f32 %v273_v27, %v270_v31  ;;  %v289_v37 = vmul.f32 %v875_v3, %v288_v35  ;;  %v292_v38 = vstv %s471_s18  ;;  %s633_s11 = scalar_lea.vmem %s632_s19, 256  ;;  %p634_p0 = scmp.lt.s32.totalorder %s900_s1, %s632_s19 }
  0x5a   : > { %v286_v39 = vadd.f32 %v285_v34, %v282_v33  ;;  %v293_v40 = vmul.f32 %v877_v6, %v292_v38  ;;  %v298_v41 = vstv %s473_s26  ;;  %p630_p4 = pneg %p629_p13  ;;  %p635_p9 = scmp.lt.s32.totalorder %s633_s11, %s627_s10 }
  0x5b   : > { %466 = vst [vmem:[%s887_s29 + $0x2] sm:$0x3] %v274_v36  ;;  %v299_v42 = vmul.f32 %v298_v41, %v231_v0  ;;  %v301_v43 = vstv %s474_s25 }
  0x5c   : > { %v290_v44 = vadd.f32 %v289_v37, %v286_v39  ;;  %v304_v45 = vstv %s475_s27  ;;  %p636_p12 = por %p635_p9, %p634_p0 }
  0x5d   : > { %v302_v46 = vadd.f32 %v301_v43, %v299_v42  ;;  %v305_v47 = vmul.f32 %v873_v1, %v304_v45  ;;  %v308_v48 = vstv %s476_s6 }
  0x5e   : > { %v294_v49 = vadd.f32 %v293_v40, %v290_v44  ;;  %v309_v50 = vmul.f32 %v875_v3, %v308_v48  ;;  %v312_v51 = vstv %s477_s22  ;;  %p637_p2 = pnand %p636_p12, %p630_p4 }
  0x5f   : > { %v306_v52 = vadd.f32 %v305_v47, %v302_v46  ;;  %v313_v53 = vmul.f32 %v877_v6, %v312_v51 }
  0x60   : > { %472 = vst [vmem:[%s887_s29 + $0x4] sm:$0x3] %v294_v49 }
  0x61   : > { %v310_v54 = vadd.f32 %v309_v50, %v306_v52 }
  0x63   : > { %v314_v55 = vadd.f32 %v313_v53, %v310_v54 }
  0x65   : > { %478 = vst [vmem:[%s887_s29 + $0x6] sm:$0x3] %v314_v55 }
  0x66   : > { %640 = shalt.err (!%p637_p2)
}
  0x67   : > { %s641_s20 = scalar_lea.hbm %s905_s21, 128  ;;  %s645_s25 = scalar_lea.hbm %s957_s3, 256 }
  0x68   : > { %p642_p8 = scmp.ne.s32.totalorder %s905_s21, %s641_s20  ;;  %p646_p10 = scmp.lt.s32.totalorder %s905_s21, %s957_s3 }
  0x69   : > { %p647_p11 = scmp.lt.s32.totalorder %s645_s25, %s641_s20 }
  0x6a   : > { %p643_p5 = pnand %p642_p8, %p968_p7 }
  0x6b   : > { %p648_p1 = por %p647_p11, %p646_p10 }
  0x6c   : > { %p644_p6 = pneg %p643_p5 }
  0x6e   : > { %p649_p3 = pnand %p648_p1, %p644_p6 }
  0x70   : > { %652 = shalt.err (!%p649_p3)
}
  0x71   : > { %s723_s6 = smov 32   ;;  %s724_s22 = smov 2  }
  0x72   : > { %496 = dma.vmem_to_hbm [thread:$0]  (%p968_p7), %s900_s1, 128, %s905_s21, %s318_s28, %s723_s6, %s723_s6, %s724_s22  }
  0x73 PF: > { %s347_s7 = sand.u32 1, %s695_s12   ;;  %p969_p13 = scmp.ne.s32.totalorder %s963_s24, 0 }
  0x74   : > { %p970_p4 = scmp.ge.s32.totalorder %s715_s17, 2  ;;  %s348_s8 = scalar_lea.sflag [#allocation4], %s347_s7 }
  0x76   : > { %p510_p0 = pnand %p970_p4, %p969_p13 }
  0x78   : > { %p511_p9 = pneg %p510_p0 }
  0x7a   : > { %690 = dma.done.wait (%p511_p9), %s348_s8, 128  }
  0x7b   : > { %692 = vsyncadd (%p511_p9), %s348_s8, 4294967168  ;;  %s21_s17 = sadd.s32 1, %s715_s17   ;;  %s971_s12 = smov %s699_s13 }
  0x7c   : > { %p18_p12 = scmp.ge.s32.totalorder %s21_s17, 4   ;;  %s972_s13 = smov %s703_s14 }
  0x7d   : > { %s973_s14 = smov %s846_s30  ;;  %s974_s15 = smov %s711_s16 }
  0x7e   : > { %s975_s16 = smov %s977_s5  ;;  %20 = sbr.rel (!%p18_p12) target bundleno = 10 (0xa), region = 93 }
  0x83   :  { %353 = vsyncpa [#allocation3], 1 }
  0x84   :  { %355 = vsyncpa [#allocation3 + $0x1], 1 }
  0x85   :  { %356 = vsyncpa [#allocation4], 1 }
  0x86   :  { %358 = vsyncpa [#allocation4 + $0x1], 1 }
  0x87   :  { %359 = vsyncpa [#allocation5], 1 }
  0x88   :  { %361 = vsyncpa [#allocation5 + $0x1], 1 }
  0x89   :  { %362 = vsyncpa [#allocation6], 1 }
  0x8a   :  { %364 = vsyncpa [#allocation6 + $0x1], 1 }

</bundles_post_ra>
